<compile_context>
chip_gen: v7x
topology: tpu7x:2x2x1
jax: 0.10.0
libtpu: 0.0.40
codegen_flags: <defaults>
</compile_context>

<pallas_src>
import functools

import jax
import jax.numpy as jnp
from jax.experimental import pallas as pl
from jax.experimental.pallas import tpu as pltpu


def _combined_loss_kernel(x_ref, t_ref, o_ref, acc_ref, *,
                          c_classes, r_tile, s_split, t_inner,
                          hw, alpha, gamma, w_focal,
                          need_mask, mask_from_block):
    # x_ref:   (1, C, R_tile, 128) logits tile (pixels dense on sublanes+lanes)
    # t_ref:   (1, R_tile, 128)    int32 targets tile
    # o_ref:   (1, 1, 128)         f32 lane-partial sums (written once per p)
    # acc_ref: (R_tile, 128)       f32 VMEM accumulator (persists across i)
    p = pl.program_id(0)
    i = pl.program_id(1)

    @pl.when(i == 0)
    def _():
        acc_ref[...] = jnp.zeros_like(acc_ref)

    # ---- class-wise max via unrolled loop over leading C axis (dense vregs) --
    m = x_ref[0, 0].astype(jnp.float32)                       # (R_tile, 128)
    for c in range(1, c_classes):
        m = jnp.maximum(m, x_ref[0, c].astype(jnp.float32))

    # ---- sum of exp + target-logit gather in a second unrolled pass ----------
    tgt = t_ref[0]                                            # (R_tile, 128) i32
    sum_exp = jnp.zeros_like(m)
    tgt_logit = jnp.zeros_like(m)
    for c in range(c_classes):
        xc = x_ref[0, c].astype(jnp.float32)
        sum_exp = sum_exp + jnp.exp(xc - m)
        tgt_logit = jnp.where(tgt == c, xc, tgt_logit)

    ce = (m + jnp.log(sum_exp)) - tgt_logit                   # (R_tile, 128)
    pt = jnp.exp(-ce)
    q = 1.0 - pt

    g = float(gamma)
    if g.is_integer() and 0.0 <= g <= 8.0:
        gi = int(g)
        if gi == 0:
            qg = jnp.ones_like(q)
        else:
            qg = q
            for _ in range(gi - 1):                           # gamma=2 -> q*q
                qg = qg * q
    else:
        qg = q ** jnp.float32(g)

    # fused per-pixel loss: (1-wf)*ce + wf*alpha*q^g*ce
    c0 = jnp.float32(1.0 - w_focal)
    c1 = jnp.float32(w_focal * alpha)
    combined = (c0 + c1 * qg) * ce                            # (R_tile, 128)

    if need_mask:
        # Only tail / duplicate tiles ever contain invalid pixels -> gate the
        # iota+compare+select behind pl.when so regular tiles skip it.
        s_idx = p % s_split
        rb_req = s_idx * t_inner + i                          # requested row-block
        hot = rb_req >= mask_from_block

        @pl.when(jnp.logical_not(hot))
        def _():
            acc_ref[...] = acc_ref[...] + combined

        @pl.when(hot)
        def _():
            row = jax.lax.broadcasted_iota(jnp.int32, combined.shape, 0)
            lane = jax.lax.broadcasted_iota(jnp.int32, combined.shape, 1)
            pix = rb_req * (r_tile * 128) + row * 128 + lane  # pixel idx in batch
            acc_ref[...] = acc_ref[...] + jnp.where(pix < hw, combined, 0.0)
    else:
        acc_ref[...] = acc_ref[...] + combined

    @pl.when(i == t_inner - 1)
    def _():
        # one cheap sublane reduce per outer index; tiny 512 B writeback
        o_ref[0] = jnp.sum(acc_ref[...], axis=0, keepdims=True)


def _vmem_capacity_bytes():
    try:
        return int(pltpu.get_tpu_info().vmem_capacity_bytes)
    except Exception:
        return 64 << 20  # conservative (v7x-sized) default


def combined_loss(inputs, targets, *, alpha_focal=0.25, gamma_focal=2,
                  weight_focal=0.5, r_tile=None):
    """inputs: (N, C, H, W) float logits (f32 or bf16); targets: (N, H, W) int ids."""
    n, c, h, w = inputs.shape
    hw = h * w
    hw128 = pl.cdiv(hw, 128) * 128

    # Minimal pad (<=127 elements) only to 128-align HW for the free reshape.
    if hw128 != hw:
        pad = hw128 - hw
        x = jnp.pad(inputs.reshape(n, c, hw), ((0, 0), (0, 0), (0, pad)))
        t = jnp.pad(targets.reshape(n, hw), ((0, 0), (0, pad)))
    else:
        x = inputs.reshape(n, c, hw)
        t = targets.reshape(n, hw)
    r = hw128 // 128
    x = x.reshape(n, c, r, 128)                    # free: trailing-dim split
    t = t.reshape(n, r, 128).astype(jnp.int32)

    # ---- generation-aware tile sizing ---------------------------------------
    vmem_cap = _vmem_capacity_bytes()
    big_vmem = vmem_cap >= (100 << 20)             # v5e/v6e: 128 MiB, v7x: 64 MiB
    budget = (6 << 20) if big_vmem else (3 << 20)  # logits bytes per tile
    vmem_limit = (96 << 20) if big_vmem else (48 << 20)

    itemsize = int(jnp.dtype(inputs.dtype).itemsize)
    if r_tile is None:
        r_tile = budget // (c * 128 * itemsize)
    r_tile = int(r_tile)
    if r_tile >= r:
        r_tile = r                                  # single tile (equals full dim)
    else:
        r_tile = max(8, (r_tile // 8) * 8)          # multiple of 8 sublanes
    n_r_tiles = pl.cdiv(r, r_tile)

    # ---- outer parallel split so v7x's 2 TCs are never idle ------------------
    s_split = 1
    if n < 4:
        s_split = max(1, min(n_r_tiles, -(-4 // n)))  # ceil(4/n), capped by tiles
    t_inner = pl.cdiv(n_r_tiles, s_split)

    covered = n_r_tiles * r_tile * 128
    has_dup = (s_split * t_inner) != n_r_tiles
    need_mask = (covered != hw) or has_dup
    mask_from_block = (n_r_tiles - 1) if (covered != hw) else n_r_tiles
    last_rb = n_r_tiles - 1

    if s_split == 1:
        x_map = lambda p, i: (p, 0, i, 0)
        t_map = lambda p, i: (p, i, 0)
    else:
        def _rb(p, i):
            rb = (p % s_split) * t_inner + i
            if has_dup:
                rb = jnp.minimum(rb, last_rb)       # clamp duplicate tail tiles
            return rb
        x_map = lambda p, i: (p // s_split, 0, _rb(p, i), 0)
        t_map = lambda p, i: (p // s_split, _rb(p, i), 0)
    o_map = lambda p, i: (p, 0, 0)

    kernel = functools.partial(
        _combined_loss_kernel,
        c_classes=int(c), r_tile=int(r_tile), s_split=int(s_split),
        t_inner=int(t_inner), hw=int(hw),
        alpha=float(alpha_focal), gamma=float(gamma_focal),
        w_focal=float(weight_focal),
        need_mask=bool(need_mask), mask_from_block=int(mask_from_block),
    )

    partials = pl.pallas_call(
        kernel,
        out_shape=jax.ShapeDtypeStruct((n * s_split, 1, 128), jnp.float32),
        grid_spec=pltpu.PrefetchScalarGridSpec(
            num_scalar_prefetch=0,
            grid=(n * s_split, t_inner),
            in_specs=[
                pl.BlockSpec((1, c, r_tile, 128), x_map),
                pl.BlockSpec((1, r_tile, 128), t_map),
            ],
            out_specs=pl.BlockSpec((1, 1, 128), o_map),
            scratch_shapes=[pltpu.VMEM((r_tile, 128), jnp.float32)],
        ),
        compiler_params=pltpu.CompilerParams(
            dimension_semantics=("parallel", "arbitrary"),
            vmem_limit_bytes=int(vmem_limit)),
    )(x, t)

    return jnp.sum(partials) / jnp.float32(n * hw)


def _reference_loss(inputs, targets, alpha=0.25, gamma=2.0, wf=0.5):
    # pure-JAX reference matching torch.nn.CrossEntropyLoss semantics
    x = jnp.transpose(inputs, (0, 2, 3, 1)).reshape(-1, inputs.shape[1])
    t = targets.reshape(-1)
    lse = jax.scipy.special.logsumexp(x.astype(jnp.float32), axis=-1)
    ce = lse - jnp.take_along_axis(x.astype(jnp.float32), t[:, None], axis=-1)[:, 0]
    pt = jnp.exp(-ce)
    focal = alpha * (1 - pt) ** gamma * ce
    return wf * jnp.mean(focal) + (1 - wf) * jnp.mean(ce)


if __name__ == "__main__":
    key = jax.random.PRNGKey(0)

    # 1) small, 128-aligned case (clean fast path, no masking)
    k1, k2, key = jax.random.split(key, 3)
    N, C, H, W = 2, 4, 16, 16
    logits = jax.random.normal(k1, (N, C, H, W), dtype=jnp.float32)
    tgts = jax.random.randint(k2, (N, H, W), 0, C, dtype=jnp.int32)
    loss = jax.block_until_ready(combined_loss(logits, tgts))
    ref = _reference_loss(logits, tgts)
    assert jnp.allclose(loss, ref, rtol=2e-4, atol=2e-5), (loss, ref)

    # 2) non-128-multiple spatial size, N=1, odd C (exercises the tail mask)
    k1, k2, key = jax.random.split(key, 3)
    N, C, H, W = 1, 3, 15, 15
    logits = jax.random.normal(k1, (N, C, H, W), dtype=jnp.float32)
    tgts = jax.random.randint(k2, (N, H, W), 0, C, dtype=jnp.int32)
    loss = jax.block_until_ready(combined_loss(logits, tgts))
    ref = _reference_loss(logits, tgts)
    assert jnp.allclose(loss, ref, rtol=2e-4, atol=2e-5), (loss, ref)

    # 3) multi-tile + outer pixel split (exercises accumulator / index maps)
    k1, k2, key = jax.random.split(key, 3)
    N, C, H, W = 2, 4, 64, 64
    logits = jax.random.normal(k1, (N, C, H, W), dtype=jnp.float32)
    tgts = jax.random.randint(k2, (N, H, W), 0, C, dtype=jnp.int32)
    loss = jax.block_until_ready(combined_loss(logits, tgts, r_tile=8))
    ref = _reference_loss(logits, tgts)
    assert jnp.allclose(loss, ref, rtol=2e-4, atol=2e-5), (loss, ref)

    print("KERNEL_OK")
</pallas_src>

<mosaic_0001>
module attributes {stable_mosaic.version = 11 : i64} {
  func.func @_combined_loss_kernel(%arg0: i32, %arg1: i32, %arg2: memref<1x4x2x128xf32, #tpu.memory_space<vmem>>, %arg3: memref<1x2x128xi32, #tpu.memory_space<vmem>>, %arg4: memref<1x1x128xf32, #tpu.memory_space<vmem>>, %arg5: memref<2x128xf32, #tpu.memory_space<vmem>>) attributes {dimension_semantics = [#tpu.dimension_semantics<parallel>, #tpu.dimension_semantics<arbitrary>], iteration_bounds = array<i64: 2, 1>, scalar_prefetch = 0 : i64, scratch_operands = 1 : i64, tpu.core_type = #tpu.core_type<tc>, window_params = [{transform_indices = @transform_0, window_bounds = array<i64: 1, 4, 2, 128>}, {transform_indices = @transform_1, window_bounds = array<i64: 1, 2, 128>}, {transform_indices = @transform_2, window_bounds = array<i64: 1, 1, 128>}]} {
    %c0_i32 = arith.constant 0 : i32
    %0 = arith.cmpi eq, %arg1, %c0_i32 : i32
    %1 = arith.extui %0 : i1 to i32
    %c0_i32_0 = arith.constant 0 : i32
    %2 = arith.cmpi ne, %1, %c0_i32_0 : i32
    scf.if %2 {
      %cst_44 = arith.constant 0.000000e+00 : f32
      %70 = vector.broadcast %cst_44 : f32 to vector<2x128xf32>
      %c0_45 = arith.constant 0 : index
      %c0_46 = arith.constant 0 : index
      %71 = vector.load %arg5[%c0_45, %c0_46] : memref<2x128xf32, #tpu.memory_space<vmem>>, vector<2x128xf32>
      tpu.vector_store %arg5[%c0_45, %c0_46], %70 {strides = array<i32>} : memref<2x128xf32, #tpu.memory_space<vmem>>, vector<2x128xf32>,
    } else {
    }
    %c0 = arith.constant 0 : index
    %c0_1 = arith.constant 0 : index
    %c0_2 = arith.constant 0 : index
    %c0_3 = arith.constant 0 : index
    %3 = vector.load %arg2[%c0, %c0_1, %c0_2, %c0_3] : memref<1x4x2x128xf32, #tpu.memory_space<vmem>>, vector<1x1x2x128xf32>
    %4 = vector.shape_cast %3 : vector<1x1x2x128xf32> to vector<2x128xf32>
    %c0_4 = arith.constant 0 : index
    %c1 = arith.constant 1 : index
    %c0_5 = arith.constant 0 : index
    %c0_6 = arith.constant 0 : index
    %5 = vector.load %arg2[%c0_4, %c1, %c0_5, %c0_6] : memref<1x4x2x128xf32, #tpu.memory_space<vmem>>, vector<1x1x2x128xf32>
    %6 = vector.shape_cast %5 : vector<1x1x2x128xf32> to vector<2x128xf32>
    %7 = arith.maximumf %4, %6 : vector<2x128xf32>
    %c0_7 = arith.constant 0 : index
    %c2 = arith.constant 2 : index
    %c0_8 = arith.constant 0 : index
    %c0_9 = arith.constant 0 : index
    %8 = vector.load %arg2[%c0_7, %c2, %c0_8, %c0_9] : memref<1x4x2x128xf32, #tpu.memory_space<vmem>>, vector<1x1x2x128xf32>
    %9 = vector.shape_cast %8 : vector<1x1x2x128xf32> to vector<2x128xf32>
    %10 = arith.maximumf %7, %9 : vector<2x128xf32>
    %c0_10 = arith.constant 0 : index
    %c3 = arith.constant 3 : index
    %c0_11 = arith.constant 0 : index
    %c0_12 = arith.constant 0 : index
    %11 = vector.load %arg2[%c0_10, %c3, %c0_11, %c0_12] : memref<1x4x2x128xf32, #tpu.memory_space<vmem>>, vector<1x1x2x128xf32>
    %12 = vector.shape_cast %11 : vector<1x1x2x128xf32> to vector<2x128xf32>
    %13 = arith.maximumf %10, %12 : vector<2x128xf32>
    %c0_13 = arith.constant 0 : index
    %c0_14 = arith.constant 0 : index
    %c0_15 = arith.constant 0 : index
    %14 = vector.load %arg3[%c0_13, %c0_14, %c0_15] : memref<1x2x128xi32, #tpu.memory_space<vmem>>, vector<1x2x128xi32>
    %15 = vector.shape_cast %14 : vector<1x2x128xi32> to vector<2x128xi32>
    %cst = arith.constant 0.000000e+00 : f32
    %16 = vector.broadcast %cst : f32 to vector<2x128xf32>
    %cst_16 = arith.constant 0.000000e+00 : f32
    %17 = vector.broadcast %cst_16 : f32 to vector<2x128xf32>
    %c0_17 = arith.constant 0 : index
    %c0_18 = arith.constant 0 : index
    %c0_19 = arith.constant 0 : index
    %c0_20 = arith.constant 0 : index
    %18 = vector.load %arg2[%c0_17, %c0_18, %c0_19, %c0_20] : memref<1x4x2x128xf32, #tpu.memory_space<vmem>>, vector<1x1x2x128xf32>
    %19 = vector.shape_cast %18 : vector<1x1x2x128xf32> to vector<2x128xf32>
    %20 = arith.subf %19, %13 : vector<2x128xf32>
    %21 = math.exp %20 : vector<2x128xf32>
    %22 = arith.addf %16, %21 : vector<2x128xf32>
    %c0_i32_21 = arith.constant 0 : i32
    %23 = vector.broadcast %c0_i32_21 : i32 to vector<2x128xi32>
    %24 = arith.cmpi eq, %15, %23 : vector<2x128xi32>
    %25 = arith.select %24, %19, %17 : vector<2x128xi1>, vector<2x128xf32>
    %c0_22 = arith.constant 0 : index
    %c1_23 = arith.constant 1 : index
    %c0_24 = arith.constant 0 : index
    %c0_25 = arith.constant 0 : index
    %26 = vector.load %arg2[%c0_22, %c1_23, %c0_24, %c0_25] : memref<1x4x2x128xf32, #tpu.memory_space<vmem>>, vector<1x1x2x128xf32>
    %27 = vector.shape_cast %26 : vector<1x1x2x128xf32> to vector<2x128xf32>
    %28 = arith.subf %27, %13 : vector<2x128xf32>
    %29 = math.exp %28 : vector<2x128xf32>
    %30 = arith.addf %22, %29 : vector<2x128xf32>
    %c1_i32 = arith.constant 1 : i32
    %31 = vector.broadcast %c1_i32 : i32 to vector<2x128xi32>
    %32 = arith.cmpi eq, %15, %31 : vector<2x128xi32>
    %33 = arith.select %32, %27, %25 : vector<2x128xi1>, vector<2x128xf32>
    %c0_26 = arith.constant 0 : index
    %c2_27 = arith.constant 2 : index
    %c0_28 = arith.constant 0 : index
    %c0_29 = arith.constant 0 : index
    %34 = vector.load %arg2[%c0_26, %c2_27, %c0_28, %c0_29] : memref<1x4x2x128xf32, #tpu.memory_space<vmem>>, vector<1x1x2x128xf32>
    %35 = vector.shape_cast %34 : vector<1x1x2x128xf32> to vector<2x128xf32>
    %36 = arith.subf %35, %13 : vector<2x128xf32>
    %37 = math.exp %36 : vector<2x128xf32>
    %38 = arith.addf %30, %37 : vector<2x128xf32>
    %c2_i32 = arith.constant 2 : i32
    %39 = vector.broadcast %c2_i32 : i32 to vector<2x128xi32>
    %40 = arith.cmpi eq, %15, %39 : vector<2x128xi32>
    %41 = arith.select %40, %35, %33 : vector<2x128xi1>, vector<2x128xf32>
    %c0_30 = arith.constant 0 : index
    %c3_31 = arith.constant 3 : index
    %c0_32 = arith.constant 0 : index
    %c0_33 = arith.constant 0 : index
    %42 = vector.load %arg2[%c0_30, %c3_31, %c0_32, %c0_33] : memref<1x4x2x128xf32, #tpu.memory_space<vmem>>, vector<1x1x2x128xf32>
    %43 = vector.shape_cast %42 : vector<1x1x2x128xf32> to vector<2x128xf32>
    %44 = arith.subf %43, %13 : vector<2x128xf32>
    %45 = math.exp %44 : vector<2x128xf32>
    %46 = arith.addf %38, %45 : vector<2x128xf32>
    %c3_i32 = arith.constant 3 : i32
    %47 = vector.broadcast %c3_i32 : i32 to vector<2x128xi32>
    %48 = arith.cmpi eq, %15, %47 : vector<2x128xi32>
    %49 = arith.select %48, %43, %41 : vector<2x128xi1>, vector<2x128xf32>
    %50 = math.log %46 : vector<2x128xf32>
    %51 = arith.addf %13, %50 : vector<2x128xf32>
    %52 = arith.subf %51, %49 : vector<2x128xf32>
    %cst_34 = arith.constant 0.000000e+00 : f32
    %53 = vector.broadcast %cst_34 : f32 to vector<2x128xf32>
    %54 = arith.subf %53, %52 : vector<2x128xf32>
    %55 = math.exp %54 : vector<2x128xf32>
    %cst_35 = arith.constant 1.000000e+00 : f32
    %56 = vector.broadcast %cst_35 : f32 to vector<2x128xf32>
    %57 = arith.subf %56, %55 : vector<2x128xf32>
    %58 = arith.mulf %57, %57 : vector<2x128xf32>
    %cst_36 = arith.constant 1.250000e-01 : f32
    %59 = vector.broadcast %cst_36 : f32 to vector<2x128xf32>
    %60 = arith.mulf %59, %58 : vector<2x128xf32>
    %cst_37 = arith.constant 5.000000e-01 : f32
    %61 = vector.broadcast %cst_37 : f32 to vector<2x128xf32>
    %62 = arith.addf %61, %60 : vector<2x128xf32>
    %63 = arith.mulf %62, %52 : vector<2x128xf32>
    %c0_38 = arith.constant 0 : index
    %c0_39 = arith.constant 0 : index
    %64 = vector.load %arg5[%c0_38, %c0_39] : memref<2x128xf32, #tpu.memory_space<vmem>>, vector<2x128xf32>
    %65 = arith.addf %64, %63 : vector<2x128xf32>
    %c0_40 = arith.constant 0 : index
    %c0_41 = arith.constant 0 : index
    %66 = vector.load %arg5[%c0_40, %c0_41] : memref<2x128xf32, #tpu.memory_space<vmem>>, vector<2x128xf32>
    tpu.vector_store %arg5[%c0_40, %c0_41], %65 {strides = array<i32>} : memref<2x128xf32, #tpu.memory_space<vmem>>, vector<2x128xf32>,
    %c0_i32_42 = arith.constant 0 : i32
    %67 = arith.cmpi eq, %arg1, %c0_i32_42 : i32
    %68 = arith.extui %67 : i1 to i32
    %c0_i32_43 = arith.constant 0 : i32
    %69 = arith.cmpi ne, %68, %c0_i32_43 : i32
    scf.if %69 {
      %c0_44 = arith.constant 0 : index
      %c0_45 = arith.constant 0 : index
      %70 = vector.load %arg5[%c0_44, %c0_45] : memref<2x128xf32, #tpu.memory_space<vmem>>, vector<2x128xf32>
      %cst_46 = arith.constant dense<0.000000e+00> : vector<128xf32>
      %71 = vector.multi_reduction <add>, %70, %cst_46 [0] : vector<2x128xf32> to vector<128xf32>
      %72 = vector.shape_cast %71 : vector<128xf32> to vector<1x128xf32>
      %c0_47 = arith.constant 0 : index
      %c0_48 = arith.constant 0 : index
      %c0_49 = arith.constant 0 : index
      %73 = vector.load %arg4[%c0_47, %c0_48, %c0_49] : memref<1x1x128xf32, #tpu.memory_space<vmem>>, vector<1x1x128xf32>
      %74 = vector.shape_cast %73 : vector<1x1x128xf32> to vector<1x128xf32>
      %75 = vector.shape_cast %72 : vector<1x128xf32> to vector<1x1x128xf32>
      tpu.vector_store %arg4[%c0_47, %c0_48, %c0_49], %75 {strides = array<i32>} : memref<1x1x128xf32, #tpu.memory_space<vmem>>, vector<1x1x128xf32>,
    } else {
    }
    return
  }
  func.func @transform_0(%arg0: i32, %arg1: i32) -> (i32, i32, i32, i32) {
    %c0_i32 = arith.constant 0 : i32
    %c0_i32_0 = arith.constant 0 : i32
    %c0_i32_1 = arith.constant 0 : i32
    return %arg0, %c0_i32, %arg1, %c0_i32_0 : i32, i32, i32, i32
  }
  func.func @transform_1(%arg0: i32, %arg1: i32) -> (i32, i32, i32) {
    %c0_i32 = arith.constant 0 : i32
    %c0_i32_0 = arith.constant 0 : i32
    return %arg0, %arg1, %c0_i32 : i32, i32, i32
  }
  func.func @transform_2(%arg0: i32, %arg1: i32) -> (i32, i32, i32) {
    %c0_i32 = arith.constant 0 : i32
    %c0_i32_0 = arith.constant 0 : i32
    %c0_i32_1 = arith.constant 0 : i32
    return %arg0, %c0_i32, %c0_i32_0 : i32, i32, i32
  }
}

</mosaic_0001>

<bundles_post_ra>
// kernel: tpu_custom_call.1
= control target key start
LH: loop header
LB: loop body
LE: loop exit
PB: predicated region body
PF: predicated region fallthrough
CT: control target
= control target key end

     0   :  { %7 = vsyncpa [#allocation4], 0  ;;  %s883_s0 = inlined_call_operand.hbm [shape: f32[2,4,2,128], index: 0, kind: input, shape index: {}]   ;;  %s884_s1 = inlined_call_operand.hbm [shape: s32[2,2,128], index: 1, kind: input, shape index: {}]   ;;  %s885_s2 = inlined_call_operand.hbm [shape: f32[2,1,128], index: 2, kind: output, shape index: {}]  }
   0x1   :  { %9 = vsyncpa [#allocation4 + $0x1], 0 }
   0x2   :  { %10 = vsyncpa [#allocation7], 0 }
   0x3   :  { %12 = vsyncpa [#allocation7 + $0x1], 0 }
   0x4   :  { %13 = vsyncpa [#allocation5], 0 }
   0x5   :  { %15 = vsyncpa [#allocation5 + $0x1], 0  ;;  %s667_s9 = smov 0   ;;  %s669_s10 = smov 0  }
   0x6   :  { %s671_s11 = smov 0   ;;  %s673_s12 = smov 0  }
   0x7   :  { %s675_s13 = smov 0   ;;  %s677_s14 = smov 0  }
   0x8 LB: > { %s397_s15 = sadd.s32 4294967295, %s644_s14   ;;  %s398_s16 = sadd.s32 4294967294, %s644_s14   ;;  %s644_s14 = sphi %s677_s14, %s21_s14   ;;  %s640_s13 = sphi %s675_s13, %s904_s13   ;;  %s636_s12 = sphi %s673_s12, %s903_s12   ;;  %s632_s11 = sphi %s671_s11, %s902_s11   ;;  %s628_s10 = sphi %s669_s10, %s901_s10   ;;  %s624_s9 = sphi %s667_s9, %s900_s9  }
   0x9   : > { %s33_s17 = sadd.s32 1, %s640_s13  ;;  %s42_s18 = sadd.s32 1, %s632_s11 }
   0xa   : > { %p35_p0 = scmp.ge.s32.totalorder %s33_s17, 2  ;;  %p49_p1 = scmp.ne.s32.totalorder %s632_s11, %s628_s10 }
   0xb   : > { %p50_p2 = scmp.eq.s32.totalorder %s644_s14, 0  ;;  %p55_p3 = scmp.ne.s32.totalorder %s628_s10, %s624_s9 }
   0xc   : > { %s906_s17 = smov (%p35_p0, %s33_s17), 0  ;;  %p56_p5 = scmp.eq.s32.totalorder %s397_s15, 0 }
   0xd   : > { %p708_p4 = por %p50_p2, %p49_p1  ;;  %s37_s20 = ssub.s32 %s640_s13, %s906_s17 }
   0xe   : > { %p107_p6 = scmp.eq.s32.totalorder %s397_s15, 1  ;;  %p40_p7 = scmp.eq.s32.totalorder %s37_s20, 0 }
   0xf   : > { %p714_p8 = por %p56_p5, %p55_p3  ;;  %p113_p10 = scmp.eq.s32.totalorder %s398_s16, 1 }
  0x10   : > { %p718_p9 = por %p107_p6, %p49_p1  ;;  %p433_p13 = scmp.lt.s32.totalorder %s644_s14, 2 }
  0x11   : > { %s889_s21 = scalar_select %p714_p8, 1, 0 }
  0x12   : > { %s890_s22 = scalar_select %p718_p9, 1, 0 }
  0x13   : > { %s723_s23 = scalar_select %p40_p7, %s632_s11, %s42_s18  }
  0x14   : > { %p725_p11 = por %p113_p10, %p55_p3  ;;  %s732_s25 = sand.u32 1, %s632_s11  }
  0x15   : > { %s401_s26 = sshll.u32 %s732_s25, 3  ;;  %s415_s27 = sshll.u32 %s640_s13, 7 }
  0x16   : > { %s891_s24 = scalar_select %p725_p11, 1, 0 }
  0x17   : > { %s739_s30 = scalar_lea.hbm %s883_s0, %s415_s27  ;;  %s137_s3 = scalar_lea.vmem [#allocation3], %s401_s26 }
  0x18   : > { %s145_s4 = sshll.u32 %s137_s3, 4  ;;  %p745_p0 = pnand %p433_p13, %p708_p4  ;;  %s741_s4 = int_to_ptr.vmem [resolvable:$true] %s145_s4 }
  0x19   : > { %s134_s6 = scalar_lea.sflag [#allocation4], %s732_s25  ;;  %s498_s7 = scalar_lea.hbm %s739_s30, 128 }
  0x1a   : > { %p499_p2 = scmp.ne.s32.totalorder %s739_s30, %s498_s7  ;;  %p500_p3 = pneg %p745_p0 }
  0x1b   : > { %s503_s16 = scalar_lea.hbm %s883_s0, 256  ;;  %p504_p4 = scmp.lt.u32.totalorder %s739_s30, %s883_s0 }
  0x1c   : > { %p501_p5 = pnand %p500_p3, %p499_p2  ;;  %p505_p7 = scmp.lt.u32.totalorder %s503_s16, %s498_s7 }
  0x1d   : > { %p507_p13 = scmp.lt.u32.totalorder %s498_s7, %s739_s30 }
  0x1e   : > { %p502_p6 = pneg %p501_p5  ;;  %p506_p10 = por %p505_p7, %p504_p4 }
  0x20   : > { %p508_p12 = por %p507_p13, %p506_p10 }
  0x22   : > { %p509_p1 = pnand %p508_p12, %p502_p6 }
  0x24   : > { %512 = shalt.err (!%p509_p1)
}
  0x25   : > { %s513_s20 = scalar_lea.vmem %s741_s4, 128  ;;  %s646_s26 = smov [#allocation3]  }
  0x26   : > { %p514_p2 = scmp.ne.s32.totalorder %s741_s4, %s513_s20  ;;  %s518_s27 = sshll.u32 %s646_s26, 4  ;;  %s519_s27 = int_to_ptr.vmem [resolvable:$false] %s518_s27 }
  0x27   : > { %s520_s28 = scalar_lea.vmem %s519_s27, 256  ;;  %p521_p9 = scmp.lt.s32.totalorder %s741_s4, %s519_s27 }
  0x28   : > { %p516_p5 = pnand %p514_p2, %p500_p3  ;;  %p522_p4 = scmp.lt.s32.totalorder %s520_s28, %s513_s20 }
  0x2a   : > { %p517_p11 = pneg %p516_p5  ;;  %p523_p7 = por %p522_p4, %p521_p9 }
  0x2c   : > { %p524_p10 = pnand %p523_p7, %p517_p11 }
  0x2e   : > { %527 = shalt.err (!%p524_p10)
}
  0x2f   : > { %s647_s29 = smov 32   ;;  %s648_s3 = smov 2  }
  0x30   : > { %425 = dma.hbm_to_vmem [thread:$0]  (!%p745_p0), %s739_s30, 128, %s741_s4, %s134_s6, %s647_s29, %s647_s29, %s648_s3  }
  0x31   : > { %p172_p12 = scmp.lt.s32.totalorder %s644_s14, 3  ;;  %s404_s7 = sshll.u32 %s732_s25, 1 }
  0x32   : > { %s405_s8 = sshll.u32 %s640_s13, 5  ;;  %p893_p9 = scmp.ge.s32.totalorder %s644_s14, 1 }
  0x33   : > { %s790_s19 = scalar_lea.hbm %s884_s1, %s405_s8  ;;  %s159_s20 = scalar_lea.vmem [#allocation6], %s404_s7 }
  0x34   : > { %p783_p11 = pnand %p893_p9, %p172_p12  ;;  %s167_s26 = sshll.u32 %s159_s20, 4  ;;  %s168_s26 = int_to_ptr.vmem [resolvable:$true] %s167_s26 }
  0x35   : > { %s156_s30 = scalar_lea.sflag [#allocation7], %s732_s25  ;;  %s528_s4 = scalar_lea.hbm %s790_s19, 32 }
  0x36   : > { %s894_s15 = scalar_select %p783_p11, 1, 0 }
  0x37   : > { %p529_p1 = scmp.ne.s32.totalorder %s790_s19, %s528_s4  ;;  %s533_s28 = scalar_lea.hbm %s884_s1, 64 }
  0x38   : > { %p534_p2 = scmp.lt.u32.totalorder %s790_s19, %s884_s1  ;;  %p535_p5 = scmp.lt.u32.totalorder %s533_s28, %s528_s4 }
  0x39   : > { %p531_p6 = pnand %p529_p1, %p500_p3  ;;  %p537_p7 = scmp.lt.u32.totalorder %s528_s4, %s790_s19 }
  0x3a   : > { %p536_p4 = por %p535_p5, %p534_p2 }
  0x3b   : > { %p532_p13 = pneg %p531_p6 }
  0x3c   : > { %p538_p10 = por %p537_p7, %p536_p4 }
  0x3e   : > { %p539_p12 = pnand %p538_p10, %p532_p13 }
  0x40   : > { %542 = shalt.err (!%p539_p12)
}
  0x41   : > { %s543_s25 = scalar_lea.vmem %s168_s26, 32  ;;  %s649_s7 = smov [#allocation6]  }
  0x42   : > { %p544_p9 = scmp.ne.s32.totalorder %s168_s26, %s543_s25  ;;  %s548_s8 = sshll.u32 %s649_s7, 4  ;;  %s549_s8 = int_to_ptr.vmem [resolvable:$false] %s548_s8 }
  0x43   : > { %s550_s16 = scalar_lea.vmem %s549_s8, 64  ;;  %p551_p8 = scmp.lt.s32.totalorder %s168_s26, %s549_s8 }
  0x44   : > { %p546_p1 = pnand %p544_p9, %p500_p3  ;;  %p552_p11 = scmp.lt.s32.totalorder %s550_s16, %s543_s25 }
  0x46   : > { %p547_p6 = pneg %p546_p1  ;;  %p553_p2 = por %p552_p11, %p551_p8 }
  0x48   : > { %p554_p5 = pnand %p553_p2, %p547_p6 }
  0x4a   : > { %557 = shalt.err (!%p554_p5)
}
  0x4b   : > { %428 = dma.hbm_to_vmem [thread:$0]  (!%p745_p0), %s790_s19, 32, %s168_s26, %s156_s30  }
  0x4c   : > { %p895_p13 = scmp.ne.s32.totalorder %s894_s15, 0 }
  0x4d   : > { %s815_s18 = sand.u32 (!%p895_p13), 1, %s628_s10   ;;  %p896_p3 = scmp.ne.s32.totalorder (!%p895_p13), %s889_s21, 0 }
  0x4e   : > { %176 = sbr.rel (%p895_p13) target bundleno = 197 (0xc5), region = 28  ;;  %s407_s20 = sshll.u32 (!%p895_p13), %s815_s18, 3 }
  0x4f   : > { %s179_s4 = scalar_lea.sflag (!%p895_p13), [#allocation4], %s815_s18  ;;  %s182_s6 = scalar_lea.vmem (!%p895_p13), [#allocation3], %s407_s20 }
  0x55   : > { %611 = dma.done.wait (%p896_p3), %s179_s4, 128  }
  0x56   : > { %613 = vsyncadd (%p896_p3), %s179_s4, 4294967168  ;;  %s408_s5 = sshll.u32 %s815_s18, 1  ;;  %s188_s15 = scalar_lea.sflag [#allocation7], %s815_s18 }
  0x57   : > { %s191_s19 = scalar_lea.vmem [#allocation6], %s408_s5 }
  0x58   : > { %615 = dma.done.wait (%p896_p3), %s188_s15, 32  }
  0x59   : > { %617 = vsyncadd (%p896_p3), %s188_s15, 4294967264  ;;  %v650_v0 = vmov 0.0   ;;  %v221_v1 = vld [vmem:[%s182_s6] sm:$0x3]  ;;  %v409_v2 = vld [vmem:[%s182_s6 + $0x2] sm:$0x3] }
  0x5a   : > { %220 = vst [vmem:[#allocation2] sm:$0x3] %v650_v0  ;;  %v410_v3 = vld [vmem:[%s182_s6 + $0x4] sm:$0x3]  ;;  %v224_v4 = vmax.f32 %v221_v1, %v409_v2  ;;  %v411_v5 = vld [vmem:[%s182_s6 + $0x6] sm:$0x3] }
  0x5b   : > { %v231_v22 = vld [vmem:[%s191_s19] sm:$0x3]  ;;  %vm275_vm4 = vcmask 1041408   ;;  %s215_s21 = scalar_lea.vmem [#allocation8], %s815_s18  ;;  %s412_s30 = sshll.u32 %s636_s12, 4 }
  0x5c   : > { %v227_v6 = vmax.f32 %v224_v4, %v410_v3  ;;  %vm236_vm0 = vcmp.eq.s32.totalorder %v231_v22, 0  ;;  %vm242_vm1 = vcmp.eq.s32.totalorder %v231_v22, 1  ;;  %vm248_vm2 = vcmp.eq.s32.totalorder %v231_v22, 2  ;;  %s297_s26 = sshll.u32 %s215_s21, 4  ;;  %s836_s29 = scalar_lea.hbm %s885_s2, %s412_s30  ;;  %s831_s26 = int_to_ptr.vmem [resolvable:$true] %s297_s26 }
  0x5d   : > { %v237_v24 = vsel %vm236_vm0, %v221_v1, 0.0  ;;  %vm254_vm3 = vcmp.eq.s32.totalorder %v231_v22, 3  ;;  %s285_s3 = scalar_lea.sflag [#allocation5], %s815_s18  ;;  %s558_s25 = scalar_lea.vmem %s831_s26, 16 }
  0x5e   : > { %v230_v7 = vmax.f32 %v227_v6, %v411_v5  ;;  %v243_v25 = vsel %vm242_vm1, %v409_v2, %v237_v24  ;;  %p559_p8 = scmp.ne.s32.totalorder %s831_s26, %s558_s25  ;;  %p897_p0 = scmp.ne.s32.totalorder %s890_s22, 0 }
  0x5f   : > { %v249_v26 = vsel %vm248_vm2, %v410_v3, %v243_v25  ;;  %s651_s12 = smov [#allocation8]  }
  0x60   : > { %v232_v8 = vsub.f32 %v221_v1, %v230_v7  ;;  %v238_v9 = vsub.f32 %v409_v2, %v230_v7  ;;  %v244_v10 = vsub.f32 %v410_v3, %v230_v7  ;;  %v250_v11 = vsub.f32 %v411_v5, %v230_v7  ;;  %p560_p11 = pnand %p559_p8, %p897_p0  ;;  %s562_s7 = sshll.u32 %s651_s12, 4  ;;  %s563_s7 = int_to_ptr.vmem [resolvable:$false] %s562_s7 }
  0x61   : > { %v255_v29 = vsel %vm254_vm3, %v411_v5, %v249_v26  ;;  %v268_v39 = vld [vmem:[#allocation2] sm:$0x3]  ;;  %s564_s8 = scalar_lea.vmem %s563_s7, 32  ;;  %p565_p7 = scmp.lt.s32.totalorder %s831_s26, %s563_s7 }
  0x62   : > { %v233_v12 = vmul.f32 1.442695, %v232_v8  ;;  %v239_v13 = vmul.f32 1.442695, %v238_v9  ;;  %v245_v14 = vmul.f32 1.442695, %v244_v10  ;;  %p561_p4 = pneg %p560_p11  ;;  %p566_p10 = scmp.lt.s32.totalorder %s564_s8, %s558_s25 }
  0x63   : > { %v251_v15 = vmul.f32 1.442695, %v250_v11 }
  0x64   : > { %486 = vpow2.f32 %v233_v12  ;;  %p567_p12 = por %p566_p10, %p565_p7 }
  0x65   : > { %488 = vpow2.f32 %v239_v13 }
  0x66   : > { %490 = vpow2.f32 %v245_v14  ;;  %p568_p9 = pnand %p567_p12, %p561_p4 }
  0x67   : > { %492 = vpow2.f32 %v251_v15 }
  0x6e   : > { %v487_v16 = vpop.eup %486 }
  0x6f   : > { %v489_v17 = vpop.eup %488 }
  0x70   : > { %v491_v18 = vpop.eup %490  ;;  %v241_v19 = vadd.f32 %v489_v17, %v487_v16 }
  0x71   : > { %v493_v20 = vpop.eup %492 }
  0x72   : > { %v247_v21 = vadd.f32 %v491_v18, %v241_v19 }
  0x74   : > { %v253_v23 = vadd.f32 %v493_v20, %v247_v21 }
  0x76   : > { %494 = vlog2.f32 %v253_v23 }
  0x80   : > { %v495_v27 = vpop.eup %494 }
  0x81   : > { %v257_v28 = vmul.f32 0.6931472, %v495_v27 }
  0x83   : > { %v258_v30 = vadd.f32 %v257_v28, %v230_v7 }
  0x85   : > { %v259_v31 = vsub.f32 %v258_v30, %v255_v29 }
  0x87   : > { %v260_v32 = vsub.f32 0.0, %v259_v31 }
  0x89   : > { %v261_v33 = vmul.f32 1.442695, %v260_v32 }
  0x8b   : > { %496 = vpow2.f32 %v261_v33 }
  0x95   : > { %v497_v34 = vpop.eup %496 }
  0x96   : > { %v263_v35 = vsub.f32 1.0, %v497_v34 }
  0x98   : > { %v264_v36 = vmul.f32 %v263_v35, %v263_v35 }
  0x9a   : > { %v265_v37 = vmul.f32 0.125, %v264_v36 }
  0x9c   : > { %v266_v38 = vadd.f32 0.5, %v265_v37 }
  0x9e   : > { %v267_v40 = vmul.f32 %v266_v38, %v259_v31 }
  0xa0   : > { %v269_v41 = vadd.f32 %v268_v39, %v267_v40 }
  0xa2   : > { %270 = vst [vmem:[#allocation2] sm:$0x3] %v269_v41 }
  0xa9   : > { %v274_v42 = vld [vmem:[#allocation2] sm:$0x3] }
  0xaa   : > { %v276_v43 = vsel %vm275_vm4, %v274_v42, 0.0 }
  0xab   : > { %v277_v44 = vrot.slane %v276_v43, 4 }
  0xad   : > { %v278_v45 = vadd.f32 %v277_v44, %v276_v43 }
  0xaf   : > { %v279_v46 = vrot.slane %v278_v45, 2 }
  0xb1   : > { %v280_v47 = vadd.f32 %v279_v46, %v278_v45 }
  0xb3   : > { %v281_v48 = vrot.slane %v280_v47, 1 }
  0xb5   : > { %v282_v49 = vadd.f32 %v281_v48, %v280_v47 }
  0xb7   : > { %283 = vst [vmem:[%s215_s21] sm:$0x1] %v282_v49 }
  0xb8   : > { %571 = shalt.err (!%p568_p9)
}
  0xb9   : > { %s572_s16 = scalar_lea.hbm %s836_s29, 16  ;;  %s576_s4 = scalar_lea.hbm %s885_s2, 32 }
  0xba   : > { %p573_p1 = scmp.ne.s32.totalorder %s836_s29, %s572_s16  ;;  %p577_p5 = scmp.lt.u32.totalorder %s836_s29, %s885_s2 }
  0xbb   : > { %p578_p13 = scmp.lt.u32.totalorder %s576_s4, %s572_s16  ;;  %p580_p8 = scmp.lt.u32.totalorder %s572_s16, %s836_s29 }
  0xbc   : > { %p574_p6 = pnand %p573_p1, %p897_p0 }
  0xbd   : > { %p579_p3 = por %p578_p13, %p577_p5 }
  0xbe   : > { %p575_p2 = pneg %p574_p6 }
  0xbf   : > { %p581_p11 = por %p580_p8, %p579_p3 }
  0xc1   : > { %p582_p4 = pnand %p581_p11, %p575_p2 }
  0xc3   : > { %585 = shalt.err (!%p582_p4)
}
  0xc4   : > { %420 = dma.vmem_to_hbm [thread:$0]  (%p897_p0), %s831_s26, 16, %s836_s29, %s285_s3  }
  0xc5 PF: > { %s309_s15 = sand.u32 1, %s624_s9   ;;  %p898_p7 = scmp.ne.s32.totalorder %s891_s24, 0 }
  0xc6   : > { %p899_p10 = scmp.ge.s32.totalorder %s644_s14, 2  ;;  %s310_s19 = scalar_lea.sflag [#allocation5], %s309_s15 }
  0xc8   : > { %p430_p12 = pnand %p899_p10, %p898_p7 }
  0xca   : > { %619 = dma.done.wait (!%p430_p12), %s310_s19, 16  }
  0xcb   : > { %621 = vsyncadd (!%p430_p12), %s310_s19, 4294967280  ;;  %s21_s14 = sadd.s32 1, %s644_s14   ;;  %s900_s9 = smov %s628_s10 }
  0xcc   : > { %p18_p9 = scmp.ge.s32.totalorder %s21_s14, 4   ;;  %s901_s10 = smov %s632_s11 }
  0xcd   : > { %s902_s11 = smov %s723_s23  ;;  %s903_s12 = smov %s640_s13 }
  0xce   : > { %s904_s13 = smov %s906_s17  ;;  %20 = sbr.rel (!%p18_p9) target bundleno = 8 (0x8), region = 97 }
  0xd5   :  { %314 = vsyncpa [#allocation4], 1 }
  0xd6   :  { %316 = vsyncpa [#allocation4 + $0x1], 1 }
  0xd7   :  { %317 = vsyncpa [#allocation7], 1 }
  0xd8   :  { %319 = vsyncpa [#allocation7 + $0x1], 1 }
  0xd9   :  { %320 = vsyncpa [#allocation5], 1 }
  0xda   :  { %322 = vsyncpa [#allocation5 + $0x1], 1 }

</bundles_post_ra>
